<compile_context>
chip_gen: v7x
topology: tpu7x:2x2x1
jax: 0.10.0
libtpu: 0.0.40
codegen_flags: <defaults>
</compile_context>

<pallas_src>
import functools

import jax
import jax.numpy as jnp
from jax.experimental import pallas as pl
from jax.experimental.pallas import tpu as pltpu


# ---------------------------------------------------------------------------
# Chip-generation knobs
# ---------------------------------------------------------------------------
@functools.lru_cache(maxsize=None)
def _tpu_vmem_capacity():
    try:
        return int(pltpu.get_tpu_info().vmem_capacity_bytes)
    except Exception:
        return 128 * 1024 * 1024  # v5e/v6e-class default


@functools.lru_cache(maxsize=None)
def _vmem_limit_bytes():
    # Raise the scoped-VMEM limit toward physical capacity, leave headroom.
    return int(_tpu_vmem_capacity() * 0.8)


@functools.lru_cache(maxsize=None)
def _has_bf16_valu():
    # v6e/v7x have bf16 VALU; v2-v5 class chips do not.
    try:
        kind = jax.devices()[0].device_kind.lower()
        return not any(v in kind for v in ("v2", "v3", "v4", "v5"))
    except Exception:
        return True


def _round_up(x, m):
    return (x + m - 1) // m * m


def _pick_hw_tile(hw, bytes_per_col, *, max_tile=8192):
    """Largest multiple-of-128 HW tile whose per-step VMEM footprint fits."""
    budget = _tpu_vmem_capacity() // 2  # headroom for double-buffer bookkeeping etc.
    t = (budget // max(bytes_per_col, 1)) // 128 * 128
    t = max(128, min(t, max_tile))
    if t >= hw:
        return hw  # single full-extent block (always a legal block shape)
    return t


# ---------------------------------------------------------------------------
# Shared in-kernel math
# ---------------------------------------------------------------------------
def _gcn_head(a, emb, w1, w2):
    """w_cls = gc2(relu(gc1(emb, adj_n)), adj_n) with adj_n = norm(A + I)."""
    n = a.shape[0]
    row = jax.lax.broadcasted_iota(jnp.int32, (n, n), 0)
    col = jax.lax.broadcasted_iota(jnp.int32, (n, n), 1)
    adj = a + jnp.where(row == col, 1.0, 0.0).astype(a.dtype)  # adj += eye
    # TODO(synk): AdjacencyHelper.transform_adj is external code; assume the
    # standard ML-GCN symmetric normalization D^{-1/2}(A+I)D^{-1/2}.
    d_row = jax.lax.rsqrt(jnp.maximum(jnp.sum(adj, axis=1, keepdims=True), 1e-6))
    d_col = jax.lax.rsqrt(jnp.maximum(jnp.sum(adj, axis=0, keepdims=True), 1e-6))
    adj_n = adj * d_row * d_col

    h = jnp.dot(adj_n, jnp.dot(emb, w1, preferred_element_type=jnp.float32),
                preferred_element_type=jnp.float32)            # gc1
    h = jnp.maximum(h, 0.0)                                    # relu
    return jnp.dot(adj_n, jnp.dot(h, w2, preferred_element_type=jnp.float32),
                   preferred_element_type=jnp.float32)         # gc2 -> (nc, K)


def _backbone_act(w, x, dtype):
    """act[k, s] = relu(sum_c w[k, c] * x[c, s]); C tiny -> unrolled VPU MAC."""
    w = w.astype(dtype)
    x = x.astype(dtype)
    acc = w[:, 0:1] * x[0:1, :]
    for c in range(1, w.shape[1]):
        acc = acc + w[:, c:c + 1] * x[c:c + 1, :]
    return jnp.maximum(acc, jnp.zeros((), dtype))              # (K, tHW)


# ---------------------------------------------------------------------------
# Kernel 1 (logits path): backbone conv + relu + global max pool + GCN head +
# logits matmul, all fused.  Grid (B, HW//tHW); the HW axis is a reduction
# carried by a VMEM running-max scratch, so it MUST stay innermost/'arbitrary'
# and be re-initialized at h_step == 0 for every image.
# ---------------------------------------------------------------------------
def _pool_logits_kernel(bw_ref, a_ref, emb_ref, w1_ref, w2_ref, x_ref,
                        o_ref, m_acc, *, hw_rem):
    h_step = pl.program_id(1)
    n_hw = pl.num_programs(1)

    @pl.when(h_step == 0)
    def _():
        # act = relu(...) >= 0 everywhere, so 0 is a valid max identity.
        m_acc[...] = jnp.zeros_like(m_acc)

    act = _backbone_act(bw_ref[...], x_ref[0], jnp.float32)           # (K, tHW)
    if hw_rem:  # last tile overhangs HW: mask out-of-range lanes (static guard)
        lane = jax.lax.broadcasted_iota(jnp.int32, act.shape, 1)
        limit = jnp.where(h_step == n_hw - 1, hw_rem, act.shape[1])
        act = jnp.where(lane < limit, act, 0.0)
    m_acc[...] = jnp.maximum(m_acc[...],
                             jnp.max(act, axis=-1, keepdims=True))    # (K, 1)

    @pl.when(h_step == n_hw - 1)
    def _():
        # Tiny GCN head, recomputed once per image (compute-only, inputs are
        # resident in VMEM); avoids an extra pallas_call + HBM round-trip of f.
        w_cls = _gcn_head(a_ref[...], emb_ref[...], w1_ref[...], w2_ref[...])
        logits = jax.lax.dot_general(m_acc[...], w_cls,               # (1, nc)
                                     (((0,), (1,)), ((), ())),
                                     preferred_element_type=jnp.float32)
        o_ref[...] = logits[None]                                     # (1, 1, nc)


def pool_logits(bw, A, emb, w1, w2, x, *, hw_tile):
    B, C, HW = x.shape
    K = bw.shape[0]
    nc = A.shape[0]
    n_hw = pl.cdiv(HW, hw_tile)
    kernel = functools.partial(_pool_logits_kernel, hw_rem=HW % hw_tile)
    out = pl.pallas_call(
        kernel,
        out_shape=jax.ShapeDtypeStruct((B, 1, nc), jnp.float32),
        grid=(B, n_hw),
        in_specs=[
            pl.BlockSpec((K, C), lambda b, h: (0, 0)),
            pl.BlockSpec((nc, nc), lambda b, h: (0, 0)),
            pl.BlockSpec((nc, emb.shape[1]), lambda b, h: (0, 0)),
            pl.BlockSpec(w1.shape, lambda b, h: (0, 0)),
            pl.BlockSpec(w2.shape, lambda b, h: (0, 0)),
            pl.BlockSpec((1, C, hw_tile), lambda b, h: (b, 0, h)),
        ],
        out_specs=pl.BlockSpec((1, 1, nc), lambda b, h: (b, 0, 0)),
        scratch_shapes=[pltpu.VMEM((K, 1), jnp.float32)],
        compiler_params=pltpu.CompilerParams(
            dimension_semantics=("parallel", "arbitrary"),
            vmem_limit_bytes=_vmem_limit_bytes()),
    )(bw, A, emb, w1, w2, x)
    return out[:, 0, :]                                               # (B, nc)


# ---------------------------------------------------------------------------
# Kernel 2 (CAM path): GCN head -> classifier weights in bf16, class dim padded
# to a multiple of 16 (bf16 sublane packing) by zero-padding A/emb, which
# leaves the first nc rows mathematically unchanged (padded rows are exactly 0).
# ---------------------------------------------------------------------------
def _gcn_weights_kernel(a_ref, emb_ref, w1_ref, w2_ref, o_ref):
    w_cls = _gcn_head(a_ref[...], emb_ref[...], w1_ref[...], w2_ref[...])
    o_ref[...] = w_cls.astype(o_ref.dtype)


def gcn_weights(A_p, emb_p, w1, w2):
    nc_pad = A_p.shape[0]
    K = w2.shape[1]
    return pl.pallas_call(
        _gcn_weights_kernel,
        out_shape=jax.ShapeDtypeStruct((nc_pad, K), jnp.bfloat16),
        grid=(1,),
        in_specs=[
            pl.BlockSpec(A_p.shape, lambda i: (0, 0)),
            pl.BlockSpec(emb_p.shape, lambda i: (0, 0)),
            pl.BlockSpec(w1.shape, lambda i: (0, 0)),
            pl.BlockSpec(w2.shape, lambda i: (0, 0)),
        ],
        out_specs=pl.BlockSpec((nc_pad, K), lambda i: (0, 0)),
    )(A_p, emb_p, w1, w2)


# ---------------------------------------------------------------------------
# Kernel 3 (CAM path): backbone conv + relu + CAM matmul + relu, fused per
# (batch, HW-tile).  The (K, tHW) activation stays in VMEM; the CAM matmul uses
# bf16 operands with f32 accumulation; output is written at nc rows (lane-dense
# HW last, sublane-masked class rows) so no padded output round-trips HBM.
# ---------------------------------------------------------------------------
def _cam_kernel(bw_ref, wcls_ref, x_ref, o_ref, *, nc, mac_dtype):
    act = _backbone_act(bw_ref[...], x_ref[0], mac_dtype).astype(jnp.bfloat16)
    cam = jnp.dot(wcls_ref[...], act,
                  preferred_element_type=jnp.float32)                 # (nc_pad, tHW)
    o_ref[...] = jnp.maximum(cam[:nc], 0.0)[None]                     # (1, nc, tHW)


def backbone_cam(bw, w_cls, x, nc, *, hw_tile, mac_dtype):
    B, C, HW = x.shape
    K = bw.shape[0]
    nc_pad = w_cls.shape[0]
    n_hw = pl.cdiv(HW, hw_tile)
    kernel = functools.partial(_cam_kernel, nc=nc, mac_dtype=mac_dtype)
    return pl.pallas_call(
        kernel,
        out_shape=jax.ShapeDtypeStruct((B, nc, HW), jnp.float32),
        grid=(B, n_hw),
        in_specs=[
            pl.BlockSpec((K, C), lambda b, h: (0, 0)),
            pl.BlockSpec((nc_pad, K), lambda b, h: (0, 0)),
            pl.BlockSpec((1, C, hw_tile), lambda b, h: (b, 0, h)),
        ],
        out_specs=pl.BlockSpec((1, nc, hw_tile), lambda b, h: (b, 0, h)),
        compiler_params=pltpu.CompilerParams(
            dimension_semantics=("parallel", "parallel"),
            vmem_limit_bytes=_vmem_limit_bytes()),
    )(bw, w_cls, x)


# ---------------------------------------------------------------------------
# GraphCAM.forward
# ---------------------------------------------------------------------------
def graph_cam_forward(imgs, params, return_cam=False, hw_tile=None):
    B, C, H, W = imgs.shape
    HW = H * W
    x = imgs.reshape(B, C, HW)
    K = params["backbone_w"].shape[0]
    nc = params["A"].shape[0]

    if not return_cam:
        # Per-HW-column VMEM bytes: 2x double-buffered input (C padded to 8
        # f32 sublanes) + one f32 act row per K channel.
        bytes_per_col = 2 * 8 * 4 + K * 4
        t = hw_tile or _pick_hw_tile(HW, bytes_per_col)
        logits = pool_logits(params["backbone_w"], params["A"], params["emb"],
                             params["gc1_w"], params["gc2_w"], x, hw_tile=t)
        return {"logits": logits}

    # --- CAM branch ---
    nc_pad = _round_up(nc, 16)                  # bf16 MXU operand sublane packing
    A_p, emb_p = params["A"], params["emb"]
    if nc_pad != nc:
        A_p = jnp.zeros((nc_pad, nc_pad), A_p.dtype).at[:nc, :nc].set(A_p)
        emb_p = jnp.zeros((nc_pad, emb_p.shape[1]), emb_p.dtype).at[:nc].set(emb_p)
    w_cls = gcn_weights(A_p, emb_p, params["gc1_w"], params["gc2_w"])  # bf16

    mac_dtype = jnp.bfloat16 if _has_bf16_valu() else jnp.float32
    act_bytes = K * 2 if mac_dtype is jnp.bfloat16 else K * 6
    bytes_per_col = (2 * 8 * 4                       # double-buffered input
                     + 2 * _round_up(nc, 8) * 4      # double-buffered output
                     + act_bytes                     # activation tile
                     + nc_pad * 4)                   # f32 cam intermediate
    t = hw_tile or _pick_hw_tile(HW, bytes_per_col)
    cams = backbone_cam(params["backbone_w"], w_cls, x, nc,
                        hw_tile=t, mac_dtype=mac_dtype)                # (B, nc, HW)
    return cams.reshape(B, nc, H, W)


# ---------------------------------------------------------------------------
# Pure-JAX reference (for correctness check only)
# ---------------------------------------------------------------------------
def reference_forward(imgs, params, return_cam=False):
    B, C, H, W = imgs.shape
    x = imgs.reshape(B, C, H * W)
    act = jnp.maximum(jnp.einsum("kc,bcs->bks", params["backbone_w"], x), 0.0)
    f = jnp.max(act, axis=-1)
    nc = params["A"].shape[0]
    adj = params["A"] + jnp.eye(nc, dtype=jnp.float32)
    d_row = jax.lax.rsqrt(jnp.maximum(adj.sum(1, keepdims=True), 1e-6))
    d_col = jax.lax.rsqrt(jnp.maximum(adj.sum(0, keepdims=True), 1e-6))
    adj_n = adj * d_row * d_col
    h = jnp.maximum(adj_n @ (params["emb"] @ params["gc1_w"]), 0.0)
    w_cls = adj_n @ (h @ params["gc2_w"])                              # (nc, K)
    if return_cam:
        cams = jnp.maximum(jnp.einsum("nk,bks->bns", w_cls, act), 0.0)
        return cams.reshape(B, nc, H, W)
    return f @ w_cls.T


if __name__ == "__main__":
    B, C, H, W = 2, 3, 16, 16     # images
    K = 32                        # backbone feature channels
    NC = 4                        # num_classes
    E = 8                         # word-embedding dim
    HID = 16                      # gc1 hidden dim

    key = jax.random.PRNGKey(0)
    ks = jax.random.split(key, 6)
    imgs = jax.random.normal(ks[0], (B, C, H, W), jnp.float32)
    A_raw = jnp.abs(jax.random.normal(ks[1], (NC, NC), jnp.float32)) * 0.1
    params = {
        "backbone_w": jax.random.normal(ks[2], (K, C), jnp.float32) * 0.1,
        "A": 0.5 * (A_raw + A_raw.T),                  # symmetric adjacency
        "emb": jax.random.normal(ks[3], (NC, E), jnp.float32),
        "gc1_w": jax.random.normal(ks[4], (E, HID), jnp.float32) * 0.1,
        "gc2_w": jax.random.normal(ks[5], (HID, K), jnp.float32) * 0.1,
    }

    out = graph_cam_forward(imgs, params, return_cam=False)
    cams = graph_cam_forward(imgs, params, return_cam=True)
    jax.block_until_ready((out["logits"], cams))

    assert out["logits"].shape == (B, NC)
    assert cams.shape == (B, NC, H, W)
    assert bool(jnp.all(cams >= 0.0))

    # numeric sanity vs plain-JAX reference (CAM tolerance loose: bf16 operands)
    logits_ref = reference_forward(imgs, params, return_cam=False)
    cams_ref = reference_forward(imgs, params, return_cam=True)
    assert bool(jnp.allclose(out["logits"], logits_ref, rtol=2e-2, atol=2e-2))
    assert bool(jnp.allclose(cams, cams_ref, rtol=5e-2, atol=5e-2))

    # multi-HW-tile path: exercises the running-max carry across grid steps and
    # per-tile CAM stores (HW=256 -> two 128-lane tiles).
    out_mt = graph_cam_forward(imgs, params, return_cam=False, hw_tile=128)
    cams_mt = graph_cam_forward(imgs, params, return_cam=True, hw_tile=128)
    jax.block_until_ready((out_mt["logits"], cams_mt))
    assert bool(jnp.allclose(out_mt["logits"], logits_ref, rtol=2e-2, atol=2e-2))
    assert bool(jnp.allclose(cams_mt, cams_ref.reshape(B, NC, H, W), rtol=5e-2, atol=5e-2))

    print("KERNEL_OK")
</pallas_src>

<mosaic_0001>
module attributes {stable_mosaic.version = 11 : i64} {
  func.func @_pool_logits_kernel(%arg0: i32, %arg1: i32, %arg2: memref<32x3xf32, #tpu.memory_space<vmem>>, %arg3: memref<4x4xf32, #tpu.memory_space<vmem>>, %arg4: memref<4x8xf32, #tpu.memory_space<vmem>>, %arg5: memref<8x16xf32, #tpu.memory_space<vmem>>, %arg6: memref<16x32xf32, #tpu.memory_space<vmem>>, %arg7: memref<1x3x256xf32, #tpu.memory_space<vmem>>, %arg8: memref<1x1x4xf32, #tpu.memory_space<vmem>>, %arg9: memref<32x1xf32, #tpu.memory_space<vmem>>) attributes {dimension_semantics = [#tpu.dimension_semantics<parallel>, #tpu.dimension_semantics<arbitrary>], iteration_bounds = array<i64: 2, 1>, scalar_prefetch = 0 : i64, scratch_operands = 1 : i64, tpu.core_type = #tpu.core_type<tc>, window_params = [{pipeline_mode = #tpu.pipeline_mode<synchronous>, transform_indices = @transform_0, window_bounds = array<i64: 32, 3>}, {pipeline_mode = #tpu.pipeline_mode<synchronous>, transform_indices = @transform_1, window_bounds = array<i64: 4, 4>}, {pipeline_mode = #tpu.pipeline_mode<synchronous>, transform_indices = @transform_2, window_bounds = array<i64: 4, 8>}, {pipeline_mode = #tpu.pipeline_mode<synchronous>, transform_indices = @transform_3, window_bounds = array<i64: 8, 16>}, {pipeline_mode = #tpu.pipeline_mode<synchronous>, transform_indices = @transform_4, window_bounds = array<i64: 16, 32>}, {transform_indices = @transform_5, window_bounds = array<i64: 1, 3, 256>}, {transform_indices = @transform_6, window_bounds = array<i64: 1, 1, 4>}]} {
    %c0_i32 = arith.constant 0 : i32
    %0 = arith.cmpi eq, %arg1, %c0_i32 : i32
    %1 = arith.extui %0 : i1 to i32
    %c0_i32_0 = arith.constant 0 : i32
    %2 = arith.cmpi ne, %1, %c0_i32_0 : i32
    scf.if %2 {
      %cst_12 = arith.constant 0.000000e+00 : f32
      %33 = vector.broadcast %cst_12 : f32 to vector<32x1xf32>
      %c0_13 = arith.constant 0 : index
      %c0_14 = arith.constant 0 : index
      %34 = vector.load %arg9[%c0_13, %c0_14] : memref<32x1xf32, #tpu.memory_space<vmem>>, vector<32x1xf32>
      tpu.vector_store %arg9[%c0_13, %c0_14], %33 {strides = array<i32>} : memref<32x1xf32, #tpu.memory_space<vmem>>, vector<32x1xf32>,
    } else {
    }
    %c0 = arith.constant 0 : index
    %c0_1 = arith.constant 0 : index
    %3 = vector.load %arg2[%c0, %c0_1] : memref<32x3xf32, #tpu.memory_space<vmem>>, vector<32x3xf32>
    %c0_2 = arith.constant 0 : index
    %c0_3 = arith.constant 0 : index
    %c0_4 = arith.constant 0 : index
    %4 = vector.load %arg7[%c0_2, %c0_3, %c0_4] : memref<1x3x256xf32, #tpu.memory_space<vmem>>, vector<1x3x256xf32>
    %5 = vector.shape_cast %4 : vector<1x3x256xf32> to vector<3x256xf32>
    %6 = vector.extract_strided_slice %3 {offsets = [0, 0], sizes = [32, 1], strides = [1, 1]} : vector<32x3xf32> to vector<32x1xf32>
    %7 = vector.extract_strided_slice %5 {offsets = [0, 0], sizes = [1, 256], strides = [1, 1]} : vector<3x256xf32> to vector<1x256xf32>
    %8 = vector.broadcast %6 : vector<32x1xf32> to vector<32x256xf32>
    %9 = vector.broadcast %7 : vector<1x256xf32> to vector<32x256xf32>
    %10 = arith.mulf %8, %9 : vector<32x256xf32>
    %11 = vector.extract_strided_slice %3 {offsets = [0, 1], sizes = [32, 1], strides = [1, 1]} : vector<32x3xf32> to vector<32x1xf32>
    %12 = vector.extract_strided_slice %5 {offsets = [1, 0], sizes = [1, 256], strides = [1, 1]} : vector<3x256xf32> to vector<1x256xf32>
    %13 = vector.broadcast %11 : vector<32x1xf32> to vector<32x256xf32>
    %14 = vector.broadcast %12 : vector<1x256xf32> to vector<32x256xf32>
    %15 = arith.mulf %13, %14 : vector<32x256xf32>
    %16 = arith.addf %10, %15 : vector<32x256xf32>
    %17 = vector.extract_strided_slice %3 {offsets = [0, 2], sizes = [32, 1], strides = [1, 1]} : vector<32x3xf32> to vector<32x1xf32>
    %18 = vector.extract_strided_slice %5 {offsets = [2, 0], sizes = [1, 256], strides = [1, 1]} : vector<3x256xf32> to vector<1x256xf32>
    %19 = vector.broadcast %17 : vector<32x1xf32> to vector<32x256xf32>
    %20 = vector.broadcast %18 : vector<1x256xf32> to vector<32x256xf32>
    %21 = arith.mulf %19, %20 : vector<32x256xf32>
    %22 = arith.addf %16, %21 : vector<32x256xf32>
    %cst = arith.constant 0.000000e+00 : f32
    %23 = vector.broadcast %cst : f32 to vector<32x256xf32>
    %24 = arith.maximumf %22, %23 : vector<32x256xf32>
    %c0_5 = arith.constant 0 : index
    %c0_6 = arith.constant 0 : index
    %25 = vector.load %arg9[%c0_5, %c0_6] : memref<32x1xf32, #tpu.memory_space<vmem>>, vector<32x1xf32>
    %cst_7 = arith.constant dense<0xFF800000> : vector<32xf32>
    %26 = vector.multi_reduction <maximumf>, %24, %cst_7 [1] : vector<32x256xf32> to vector<32xf32>
    %27 = vector.shape_cast %26 : vector<32xf32> to vector<32x1xf32>
    %28 = arith.maximumf %25, %27 : vector<32x1xf32>
    %c0_8 = arith.constant 0 : index
    %c0_9 = arith.constant 0 : index
    %29 = vector.load %arg9[%c0_8, %c0_9] : memref<32x1xf32, #tpu.memory_space<vmem>>, vector<32x1xf32>
    tpu.vector_store %arg9[%c0_8, %c0_9], %28 {strides = array<i32>} : memref<32x1xf32, #tpu.memory_space<vmem>>, vector<32x1xf32>,
    %c0_i32_10 = arith.constant 0 : i32
    %30 = arith.cmpi eq, %arg1, %c0_i32_10 : i32
    %31 = arith.extui %30 : i1 to i32
    %c0_i32_11 = arith.constant 0 : i32
    %32 = arith.cmpi ne, %31, %c0_i32_11 : i32
    scf.if %32 {
      %c0_12 = arith.constant 0 : index
      %c0_13 = arith.constant 0 : index
      %33 = vector.load %arg3[%c0_12, %c0_13] : memref<4x4xf32, #tpu.memory_space<vmem>>, vector<4x4xf32>
      %c0_14 = arith.constant 0 : index
      %c0_15 = arith.constant 0 : index
      %34 = vector.load %arg4[%c0_14, %c0_15] : memref<4x8xf32, #tpu.memory_space<vmem>>, vector<4x8xf32>
      %c0_16 = arith.constant 0 : index
      %c0_17 = arith.constant 0 : index
      %35 = vector.load %arg5[%c0_16, %c0_17] : memref<8x16xf32, #tpu.memory_space<vmem>>, vector<8x16xf32>
      %c0_18 = arith.constant 0 : index
      %c0_19 = arith.constant 0 : index
      %36 = vector.load %arg6[%c0_18, %c0_19] : memref<16x32xf32, #tpu.memory_space<vmem>>, vector<16x32xf32>
      %37 = tpu.iota {dimensions = array<i32: 0>} : vector<4x4xi32>
      %38 = tpu.iota {dimensions = array<i32: 1>} : vector<4x4xi32>
      %39 = arith.cmpi eq, %37, %38 : vector<4x4xi32>
      %cst_20 = arith.constant 1.000000e+00 : f32
      %cst_21 = arith.constant 0.000000e+00 : f32
      %40 = vector.broadcast %cst_20 : f32 to vector<4x4xf32>
      %41 = vector.broadcast %cst_21 : f32 to vector<4x4xf32>
      %42 = arith.select %39, %40, %41 : vector<4x4xi1>, vector<4x4xf32>
      %43 = arith.addf %33, %42 : vector<4x4xf32>
      %cst_22 = arith.constant dense<0.000000e+00> : vector<4xf32>
      %44 = vector.multi_reduction <add>, %43, %cst_22 [1] : vector<4x4xf32> to vector<4xf32>
      %45 = vector.shape_cast %44 : vector<4xf32> to vector<4x1xf32>
      %cst_23 = arith.constant 9.99999997E-7 : f32
      %46 = vector.broadcast %cst_23 : f32 to vector<4x1xf32>
      %47 = arith.maximumf %45, %46 : vector<4x1xf32>
      %48 = math.rsqrt %47 : vector<4x1xf32>
      %cst_24 = arith.constant dense<0.000000e+00> : vector<4xf32>
      %49 = vector.multi_reduction <add>, %43, %cst_24 [0] : vector<4x4xf32> to vector<4xf32>
      %50 = vector.shape_cast %49 : vector<4xf32> to vector<1x4xf32>
      %cst_25 = arith.constant 9.99999997E-7 : f32
      %51 = vector.broadcast %cst_25 : f32 to vector<1x4xf32>
      %52 = arith.maximumf %50, %51 : vector<1x4xf32>
      %53 = math.rsqrt %52 : vector<1x4xf32>
      %54 = vector.broadcast %48 : vector<4x1xf32> to vector<4x4xf32>
      %55 = arith.mulf %43, %54 : vector<4x4xf32>
      %56 = vector.broadcast %53 : vector<1x4xf32> to vector<4x4xf32>
      %57 = arith.mulf %55, %56 : vector<4x4xf32>
      %cst_26 = arith.constant dense<0.000000e+00> : vector<4x16xf32>
      %58 = tpu.matmul %34, %35, %cst_26 {dimension_numbers = #tpu.dot_dimension_numbers<[1], [0], [0], [1], [0, 0, 1, 1], [], []>} : vector<4x8xf32>, vector<8x16xf32>, vector<4x16xf32> -> vector<4x16xf32>
      %cst_27 = arith.constant dense<0.000000e+00> : vector<4x16xf32>
      %59 = tpu.matmul %57, %58, %cst_27 {dimension_numbers = #tpu.dot_dimension_numbers<[1], [0], [0], [1], [0, 0, 1, 1], [], []>} : vector<4x4xf32>, vector<4x16xf32>, vector<4x16xf32> -> vector<4x16xf32>
      %cst_28 = arith.constant 0.000000e+00 : f32
      %60 = vector.broadcast %cst_28 : f32 to vector<4x16xf32>
      %61 = arith.maximumf %59, %60 : vector<4x16xf32>
      %cst_29 = arith.constant dense<0.000000e+00> : vector<4x32xf32>
      %62 = tpu.matmul %61, %36, %cst_29 {dimension_numbers = #tpu.dot_dimension_numbers<[1], [0], [0], [1], [0, 0, 1, 1], [], []>} : vector<4x16xf32>, vector<16x32xf32>, vector<4x32xf32> -> vector<4x32xf32>
      %cst_30 = arith.constant dense<0.000000e+00> : vector<4x32xf32>
      %63 = tpu.matmul %57, %62, %cst_30 {dimension_numbers = #tpu.dot_dimension_numbers<[1], [0], [0], [1], [0, 0, 1, 1], [], []>} : vector<4x4xf32>, vector<4x32xf32>, vector<4x32xf32> -> vector<4x32xf32>
      %c0_31 = arith.constant 0 : index
      %c0_32 = arith.constant 0 : index
      %64 = vector.load %arg9[%c0_31, %c0_32] : memref<32x1xf32, #tpu.memory_space<vmem>>, vector<32x1xf32>
      %cst_33 = arith.constant dense<0.000000e+00> : vector<1x4xf32>
      %65 = tpu.matmul %64, %63, %cst_33 {dimension_numbers = #tpu.dot_dimension_numbers<[0], [1], [1], [0], [0, 1, 1, 0], [], []>} : vector<32x1xf32>, vector<4x32xf32>, vector<1x4xf32> -> vector<1x4xf32>
      %66 = vector.shape_cast %65 : vector<1x4xf32> to vector<1x1x4xf32>
      %c0_34 = arith.constant 0 : index
      %c0_35 = arith.constant 0 : index
      %c0_36 = arith.constant 0 : index
      %67 = vector.load %arg8[%c0_34, %c0_35, %c0_36] : memref<1x1x4xf32, #tpu.memory_space<vmem>>, vector<1x1x4xf32>
      tpu.vector_store %arg8[%c0_34, %c0_35, %c0_36], %66 {strides = array<i32>} : memref<1x1x4xf32, #tpu.memory_space<vmem>>, vector<1x1x4xf32>,
    } else {
    }
    return
  }
  func.func @transform_0(%arg0: i32, %arg1: i32) -> (i32, i32) {
    %c0_i32 = arith.constant 0 : i32
    %c0_i32_0 = arith.constant 0 : i32
    %c0_i32_1 = arith.constant 0 : i32
    return %c0_i32, %c0_i32_0 : i32, i32
  }
  func.func @transform_1(%arg0: i32, %arg1: i32) -> (i32, i32) {
    %c0_i32 = arith.constant 0 : i32
    %c0_i32_0 = arith.constant 0 : i32
    %c0_i32_1 = arith.constant 0 : i32
    return %c0_i32, %c0_i32_0 : i32, i32
  }
  func.func @transform_2(%arg0: i32, %arg1: i32) -> (i32, i32) {
    %c0_i32 = arith.constant 0 : i32
    %c0_i32_0 = arith.constant 0 : i32
    %c0_i32_1 = arith.constant 0 : i32
    return %c0_i32, %c0_i32_0 : i32, i32
  }
  func.func @transform_3(%arg0: i32, %arg1: i32) -> (i32, i32) {
    %c0_i32 = arith.constant 0 : i32
    %c0_i32_0 = arith.constant 0 : i32
    %c0_i32_1 = arith.constant 0 : i32
    return %c0_i32, %c0_i32_0 : i32, i32
  }
  func.func @transform_4(%arg0: i32, %arg1: i32) -> (i32, i32) {
    %c0_i32 = arith.constant 0 : i32
    %c0_i32_0 = arith.constant 0 : i32
    %c0_i32_1 = arith.constant 0 : i32
    return %c0_i32, %c0_i32_0 : i32, i32
  }
  func.func @transform_5(%arg0: i32, %arg1: i32) -> (i32, i32, i32) {
    %c0_i32 = arith.constant 0 : i32
    %c0_i32_0 = arith.constant 0 : i32
    return %arg0, %c0_i32, %arg1 : i32, i32, i32
  }
  func.func @transform_6(%arg0: i32, %arg1: i32) -> (i32, i32, i32) {
    %c0_i32 = arith.constant 0 : i32
    %c0_i32_0 = arith.constant 0 : i32
    %c0_i32_1 = arith.constant 0 : i32
    return %arg0, %c0_i32, %c0_i32_0 : i32, i32, i32
  }
}

</mosaic_0001>

<bundles_post_ra>
// kernel: tpu_custom_call.1
= control target key start
LH: loop header
LB: loop body
LE: loop exit
PB: predicated region body
PF: predicated region fallthrough
CT: control target
= control target key end

     0   :  { %s2028_s0 = inlined_call_operand.hbm [shape: f32[32,3], index: 0, kind: input, shape index: {}]   ;;  %s2029_s1 = inlined_call_operand.hbm [shape: f32[4,4], index: 1, kind: input, shape index: {}]   ;;  %s2030_s2 = inlined_call_operand.hbm [shape: f32[4,8], index: 2, kind: input, shape index: {}]   ;;  %s2031_s3 = inlined_call_operand.hbm [shape: f32[8,16], index: 3, kind: input, shape index: {}]   ;;  %s2032_s4 = inlined_call_operand.hbm [shape: f32[16,32], index: 4, kind: input, shape index: {}]   ;;  %s2033_s5 = inlined_call_operand.hbm [shape: f32[2,3,256], index: 5, kind: input, shape index: {}]   ;;  %s2034_s6 = inlined_call_operand.hbm [shape: f32[2,1,4], index: 6, kind: output, shape index: {}]  }
   0x1   :  { %2040 = sst [smem:[#allocation20_spill]] %s2029_s1 }
   0x2   :  { %2041 = sst [smem:[#allocation21_spill]] %s2031_s3 }
   0x3   :  { %11 = vsyncpa [#allocation4], 0 }
   0x4   :  { %12 = vsyncpa [#allocation7], 0 }
   0x5   :  { %13 = vsyncpa [#allocation10], 0 }
   0x6   :  { %14 = vsyncpa [#allocation13], 0 }
   0x7   :  { %16 = vsyncpa [#allocation13 + $0x1], 0 }
   0x8   :  { %17 = vsyncpa [#allocation5], 0 }
   0x9   :  { %19 = vsyncpa [#allocation5 + $0x1], 0  ;;  %s1656_s21 = smov 0   ;;  %s1658_s22 = smov 0  }
   0xa   :  { %s1660_s23 = smov 0   ;;  %s1662_s24 = smov 0  }
   0xb   :  { %s1664_s25 = smov 0   ;;  %s1666_s26 = smov 0  }
   0xc LB: > { %s1606_s27 = smov [#allocation6]   ;;  %s2038_s29 = sadd.s32 4294967295, %s1604_s26   ;;  %s1604_s26 = sphi %s1666_s26, %s25_s26   ;;  %s1600_s25 = sphi %s1664_s25, %s2064_s25   ;;  %s1596_s24 = sphi %s1662_s24, %s2063_s24   ;;  %s1592_s23 = sphi %s1660_s23, %s2062_s23   ;;  %s1588_s22 = sphi %s1658_s22, %s2061_s22   ;;  %s1584_s21 = sphi %s1656_s21, %s2060_s21  }
   0xd   : > { %s227_s28 = sshll.u32 %s1606_s27, 4  ;;  %p1133_p0 = scmp.ge.s32.totalorder %s1604_s26, 1  ;;  %s228_s28 = int_to_ptr.vmem [resolvable:$true] %s227_s28 }
   0xe   : > { %p1690_p1 = scmp.eq.s32.totalorder %s2038_s29, 0  ;;  %p201_p2 = scmp.lt.s32.totalorder %s1604_s26, 3 }
   0xf   : > { %s1607_s8 = smov [#allocation9]   ;;  %s1608_s11 = smov [#allocation3]  }
  0x10   : > { %s2042_s30 = scalar_select %p1690_p1, 1, 0 }
  0x11   : > { %p1695_p3 = pnand %p1133_p0, %p201_p2  ;;  %s249_s9 = sshll.u32 %s1607_s8, 4  ;;  %s1702_s9 = int_to_ptr.vmem [resolvable:$true] %s249_s9 }
  0x12   : > { %s213_s12 = sshll.u32 %s1608_s11, 4  ;;  %s2045_s1 = sld [smem:[#allocation20_spill]]  ;;  %s1710_s12 = int_to_ptr.vmem [resolvable:$true] %s213_s12 }
  0x13   : > { %s2043_s7 = scalar_select %p1695_p3, 1, 0 }
  0x14   : > { %p1227_p5 = pneg %p1695_p3 }
  0x16   : > { %p1706_p6 = pnand %p1227_p5, %p1690_p1 }
  0x18   : > { %s1340_s15 = scalar_lea.hbm %s2045_s1, 64  ;;  %p1720_p8 = pneg %p1706_p6 }
  0x19   : > { %p1341_p7 = scmp.ne.s32.totalorder %s2045_s1, %s1340_s15  ;;  %p1347_p11 = scmp.lt.u32.totalorder %s1340_s15, %s2045_s1 }
  0x1b   : > { %p1343_p9 = pnand %p1720_p8, %p1341_p7 }
  0x1d   : > { %p1344_p10 = pneg %p1343_p9 }
  0x1f   : > { %p1349_p12 = pnand %p1347_p11, %p1344_p10 }
  0x21   : > { %1352 = shalt.err (!%p1349_p12)
}
  0x22   : > { %s1353_s27 = scalar_lea.vmem %s228_s28, 64  ;;  %p1361_p5 = scmp.lt.s32.totalorder %s228_s28, %s228_s28 }
  0x23   : > { %p1354_p13 = scmp.ne.s32.totalorder %s228_s28, %s1353_s27  ;;  %p1362_p4 = scmp.lt.s32.totalorder %s1353_s27, %s1353_s27 }
  0x25   : > { %p1356_p0 = pnand %p1354_p13, %p1720_p8  ;;  %p1363_p3 = por %p1362_p4, %p1361_p5 }
  0x27   : > { %p1357_p2 = pneg %p1356_p0 }
  0x29   : > { %p1364_p1 = pnand %p1363_p3, %p1357_p2 }
  0x2b   : > { %1367 = shalt.err (!%p1364_p1)
}
  0x2c   : > { %1233 = dma.hbm_to_vmem [thread:$0]  (!%p1706_p6), %s2045_s1, 64, %s228_s28, [#allocation7]  }
  0x2d   : > { %s2047_s3 = sld [smem:[#allocation21_spill]] }
  0x33   : > { %s1368_s15 = scalar_lea.hbm %s2047_s3, 128 }
  0x34   : > { %p1369_p7 = scmp.ne.s32.totalorder %s2047_s3, %s1368_s15  ;;  %p1375_p1 = scmp.lt.u32.totalorder %s1368_s15, %s2047_s3 }
  0x36   : > { %p1371_p9 = pnand %p1369_p7, %p1720_p8 }
  0x38   : > { %p1372_p4 = pneg %p1371_p9 }
  0x3a   : > { %p1377_p3 = pnand %p1375_p1, %p1372_p4 }
  0x3c   : > { %1380 = shalt.err (!%p1377_p3)
}
  0x3d   : > { %s1381_s28 = scalar_lea.vmem %s1702_s9, 128  ;;  %p1389_p13 = scmp.lt.s32.totalorder %s1702_s9, %s1702_s9 }
  0x3e   : > { %p1382_p10 = scmp.ne.s32.totalorder %s1702_s9, %s1381_s28  ;;  %p1390_p0 = scmp.lt.s32.totalorder %s1381_s28, %s1381_s28 }
  0x40   : > { %p1384_p11 = pnand %p1382_p10, %p1720_p8  ;;  %p1391_p2 = por %p1390_p0, %p1389_p13 }
  0x42   : > { %p1385_p12 = pneg %p1384_p11 }
  0x44   : > { %p1392_p5 = pnand %p1391_p2, %p1385_p12 }
  0x46   : > { %1395 = shalt.err (!%p1392_p5)
}
  0x47   : > { %1239 = dma.hbm_to_vmem [thread:$0]  (!%p1706_p6), %s2047_s3, 128, %s1702_s9, [#allocation10]  }
  0x48   : > { %s1396_s14 = scalar_lea.hbm %s2028_s0, 512 }
  0x49   : > { %p1397_p7 = scmp.ne.s32.totalorder %s2028_s0, %s1396_s14  ;;  %p1403_p1 = scmp.lt.u32.totalorder %s1396_s14, %s2028_s0 }
  0x4b   : > { %p1399_p9 = pnand %p1397_p7, %p1720_p8 }
  0x4d   : > { %p1400_p4 = pneg %p1399_p9 }
  0x4f   : > { %p1405_p3 = pnand %p1403_p1, %p1400_p4 }
  0x51   : > { %1408 = shalt.err (!%p1405_p3)
}
  0x52   : > { %s1409_s9 = scalar_lea.vmem %s1710_s12, 512  ;;  %p1417_p13 = scmp.lt.s32.totalorder %s1710_s12, %s1710_s12 }
  0x53   : > { %p1410_p10 = scmp.ne.s32.totalorder %s1710_s12, %s1409_s9  ;;  %p1418_p0 = scmp.lt.s32.totalorder %s1409_s9, %s1409_s9 }
  0x55   : > { %p1412_p11 = pnand %p1410_p10, %p1720_p8  ;;  %p1419_p2 = por %p1418_p0, %p1417_p13 }
  0x57   : > { %p1413_p12 = pneg %p1412_p11 }
  0x59   : > { %p1420_p5 = pnand %p1419_p2, %p1413_p12 }
  0x5b   : > { %1423 = shalt.err (!%p1420_p5)
}
  0x5c   : > { %s1609_s20 = smov 128   ;;  %s1610_s28 = smov 8  }
  0x5d   : > { %1230 = dma.hbm_to_vmem [thread:$0]  (!%p1706_p6), %s2028_s0, 512, %s1710_s12, [#allocation4], %s1609_s20, %s1609_s20, %s1610_s28  }
  0x5e   : > { %s1611_s11 = smov [#allocation8]   ;;  %s1612_s14 = smov [#allocation11]  }
  0x5f   : > { %s238_s13 = sshll.u32 %s1611_s11, 4  ;;  %s259_s15 = sshll.u32 %s1612_s14, 4  ;;  %s239_s13 = int_to_ptr.vmem [resolvable:$true] %s238_s13  ;;  %s260_s15 = int_to_ptr.vmem [resolvable:$true] %s259_s15 }
  0x60   : > { %s1424_s19 = scalar_lea.hbm %s2030_s2, 64 }
  0x61   : > { %p1425_p7 = scmp.ne.s32.totalorder %s2030_s2, %s1424_s19  ;;  %p1431_p1 = scmp.lt.u32.totalorder %s1424_s19, %s2030_s2 }
  0x63   : > { %p1427_p9 = pnand %p1425_p7, %p1720_p8 }
  0x65   : > { %p1428_p4 = pneg %p1427_p9 }
  0x67   : > { %p1433_p3 = pnand %p1431_p1, %p1428_p4 }
  0x69   : > { %1436 = shalt.err (!%p1433_p3)
}
  0x6a   : > { %s1437_s12 = scalar_lea.vmem %s239_s13, 64  ;;  %p1445_p13 = scmp.lt.s32.totalorder %s239_s13, %s239_s13 }
  0x6b   : > { %p1438_p10 = scmp.ne.s32.totalorder %s239_s13, %s1437_s12  ;;  %p1446_p0 = scmp.lt.s32.totalorder %s1437_s12, %s1437_s12 }
  0x6d   : > { %p1440_p11 = pnand %p1438_p10, %p1720_p8  ;;  %p1447_p2 = por %p1446_p0, %p1445_p13 }
  0x6f   : > { %p1441_p12 = pneg %p1440_p11 }
  0x71   : > { %p1448_p5 = pnand %p1447_p2, %p1441_p12 }
  0x73   : > { %1451 = shalt.err (!%p1448_p5)
}
  0x74   : > { %1236 = dma.hbm_to_vmem [thread:$0]  (!%p1706_p6), %s2030_s2, 64, %s239_s13, [#allocation7]  }
  0x75   : > { %s1452_s8 = scalar_lea.hbm %s2032_s4, 256 }
  0x76   : > { %p1453_p7 = scmp.ne.s32.totalorder %s2032_s4, %s1452_s8  ;;  %p1459_p1 = scmp.lt.u32.totalorder %s1452_s8, %s2032_s4 }
  0x78   : > { %p1455_p9 = pnand %p1453_p7, %p1720_p8 }
  0x7a   : > { %p1456_p4 = pneg %p1455_p9 }
  0x7c   : > { %p1461_p3 = pnand %p1459_p1, %p1456_p4 }
  0x7e   : > { %1464 = shalt.err (!%p1461_p3)
}
  0x7f   : > { %s1465_s19 = scalar_lea.vmem %s260_s15, 256  ;;  %p1473_p13 = scmp.lt.s32.totalorder %s260_s15, %s260_s15 }
  0x80   : > { %p1466_p10 = scmp.ne.s32.totalorder %s260_s15, %s1465_s19  ;;  %p1474_p0 = scmp.lt.s32.totalorder %s1465_s19, %s1465_s19 }
  0x82   : > { %p1468_p11 = pnand %p1466_p10, %p1720_p8  ;;  %p1475_p2 = por %p1474_p0, %p1473_p13 }
  0x84   : > { %p1469_p12 = pneg %p1468_p11 }
  0x86   : > { %p1476_p5 = pnand %p1475_p2, %p1469_p12 }
  0x88   : > { %1479 = shalt.err (!%p1476_p5)
}
  0x89   : > { %1242 = dma.hbm_to_vmem [thread:$0]  (!%p1706_p6), %s2032_s4, 256, %s260_s15, [#allocation10], %s1609_s20, %s1609_s20, %s1610_s28  }
  0x8a   : > { %s1132_s10 = sadd.s32 4294967294, %s1604_s26   ;;  %s37_s18 = sadd.s32 1, %s1600_s25 }
  0x8b   : > { %s151_s12 = sadd.s32 1, %s1592_s23  ;;  %p39_p8 = scmp.ge.s32.totalorder %s37_s18, 2 }
  0x8c   : > { %p158_p7 = scmp.ne.s32.totalorder %s1592_s23, %s1588_s22  ;;  %p159_p9 = scmp.eq.s32.totalorder %s1604_s26, 0 }
  0x8d   : > { %p164_p4 = scmp.ne.s32.totalorder %s1588_s22, %s1584_s21  ;;  %s2066_s18 = smov (%p39_p8, %s37_s18), 0 }
  0x8e   : > { %p1834_p1 = por %p159_p9, %p158_p7  ;;  %p2049_p3 = scmp.ne.s32.totalorder %s2042_s30, 0 }
  0x8f   : > { %s146_s28 = ssub.s32 %s1600_s25, %s2066_s18  ;;  %s2051_s15 = sadd.s32 4294967295, %s1604_s26  }
  0x90   : > { %p1840_p6 = por %p2049_p3, %p164_p4  ;;  %p188_p10 = scmp.eq.s32.totalorder %s2051_s15, 1 }
  0x91   : > { %p149_p11 = scmp.eq.s32.totalorder %s146_s28, 0  ;;  %p194_p12 = scmp.eq.s32.totalorder %s1132_s10, 1 }
  0x92   : > { %p1848_p13 = por %p188_p10, %p158_p7  ;;  %p1256_p0 = scmp.lt.s32.totalorder %s1604_s26, 2 }
  0x93   : > { %s1854_s1 = scalar_select %p149_p11, %s1592_s23, %s151_s12  }
  0x94   : > { %s2052_s27 = scalar_select %p1848_p13, 1, 0 }
  0x95   : > { %p1856_p2 = por %p194_p12, %p164_p4  ;;  %s273_s8 = sand.u32 1, %s1592_s23  }
  0x96   : > { %s1140_s11 = sshll.u32 %s273_s8, 3  ;;  %s1161_s14 = sshll.u32 %s1600_s25, 7 }
  0x97   : > { %s2053_s3 = scalar_select %p1856_p2, 1, 0 }
  0x98   : > { %s1865_s19 = scalar_lea.hbm %s2033_s5, %s1161_s14  ;;  %s277_s13 = scalar_lea.vmem [#allocation12], %s1140_s11 }
  0x99   : > { %s287_s9 = sshll.u32 %s277_s13, 4  ;;  %p1871_p5 = pnand %p1256_p0, %p1834_p1  ;;  %s1867_s9 = int_to_ptr.vmem [resolvable:$true] %s287_s9 }
  0x9a   : > { %s274_s12 = scalar_lea.sflag [#allocation13], %s273_s8  ;;  %s1480_s28 = scalar_lea.hbm %s1865_s19, 128 }
  0x9b   : > { %p1481_p8 = scmp.ne.s32.totalorder %s1865_s19, %s1480_s28  ;;  %p1482_p7 = pneg %p1871_p5 }
  0x9c   : > { %s1485_s14 = scalar_lea.hbm %s2033_s5, 256  ;;  %p1486_p1 = scmp.lt.u32.totalorder %s1865_s19, %s2033_s5 }
  0x9d   : > { %p1483_p9 = pnand %p1482_p7, %p1481_p8  ;;  %p1487_p3 = scmp.lt.u32.totalorder %s1485_s14, %s1480_s28 }
  0x9e   : > { %p1489_p11 = scmp.lt.u32.totalorder %s1480_s28, %s1865_s19 }
  0x9f   : > { %p1484_p4 = pneg %p1483_p9  ;;  %p1488_p10 = por %p1487_p3, %p1486_p1 }
  0xa1   : > { %p1490_p12 = por %p1489_p11, %p1488_p10 }
  0xa3   : > { %p1491_p0 = pnand %p1490_p12, %p1484_p4 }
  0xa5   : > { %1494 = shalt.err (!%p1491_p0)
}
  0xa6   : > { %s1495_s8 = scalar_lea.vmem %s1867_s9, 128  ;;  %s1613_s17 = smov [#allocation12]  }
  0xa7   : > { %p1496_p8 = scmp.ne.s32.totalorder %s1867_s9, %s1495_s8  ;;  %s1500_s13 = sshll.u32 %s1613_s17, 4  ;;  %s1501_s13 = int_to_ptr.vmem [resolvable:$false] %s1500_s13 }
  0xa8   : > { %s1502_s15 = scalar_lea.vmem %s1501_s13, 256  ;;  %p1503_p13 = scmp.lt.s32.totalorder %s1867_s9, %s1501_s13 }
  0xa9   : > { %p1498_p9 = pnand %p1496_p8, %p1482_p7  ;;  %p1504_p1 = scmp.lt.s32.totalorder %s1502_s15, %s1495_s8 }
  0xab   : > { %p1499_p2 = pneg %p1498_p9  ;;  %p1505_p3 = por %p1504_p1, %p1503_p13 }
  0xad   : > { %p1506_p10 = pnand %p1505_p3, %p1499_p2 }
  0xaf   : > { %1509 = shalt.err (!%p1506_p10)
}
  0xb0   : > { %1246 = dma.hbm_to_vmem [thread:$0]  (!%p1871_p5), %s1865_s19, 128, %s1867_s9, %s274_s12  }
  0xb1   : > { %p2055_p4 = scmp.ne.s32.totalorder %s2043_s7, 0 }
  0xb2   : > { %p2056_p7 = scmp.ne.s32.totalorder (!%p2055_p4), %s2042_s30, 0 }
  0xb3   : > { %296 = sbr.rel (%p2055_p4) target bundleno = 1280 (0x500), region = 44 }
  0xba   : > { %1563 = dma.done.wait (%p2056_p7), [#allocation4], 512  }
  0xbb   : > { %1565 = vsyncadd (%p2056_p7), [#allocation4], 4294966784 }
  0xbc   : > { %1567 = dma.done.wait (%p2056_p7), [#allocation7], 128  }
  0xbd   : > { %1569 = vsyncadd (%p2056_p7), [#allocation7], 4294967168 }
  0xbe   : > { %1571 = dma.done.wait (%p2056_p7), [#allocation10], 384  }
  0xbf   : > { %1573 = vsyncadd (%p2056_p7), [#allocation10], 4294966912  ;;  %s1915_s7 = sand.u32 1, %s1588_s22  }
  0xc0   : > { %s1149_s19 = sshll.u32 %s1915_s7, 3  ;;  %s319_s9 = scalar_lea.sflag [#allocation13], %s1915_s7 }
  0xc1   : > { %s1919_s10 = scalar_lea.vmem [#allocation12], %s1149_s19 }
  0xc2   : > { %1575 = dma.done.wait (%p1840_p6), %s319_s9, 128  }
  0xc3   : > { %1577 = vsyncadd (%p1840_p6), %s319_s9, 4294967168  ;;  %v386_v0 = vlaneseq  ;;  %v1614_v1 = vmov 0.0   ;;  %vm1615_vm0 = vmmov 0   ;;  %vm576_vm2 = vcmask 64512   ;;  %v550_v5 = vld [vmem:[#allocation9] sm:$0xff]  ;;  %v360_v10 = vld [vmem:[#allocation3] sm:$0xff] }
  0xc4   : > { %1173 = vmatprep.subr.mxu0 %v1614_v1  ;;  %1175 = vmatprep.mubr.msk.f32.mxu0 %vm1615_vm0, %v1614_v1  ;;  %v549_v6 = vld [vmem:[#allocation8] sm:$0xf]  ;;  %v548_v7 = vld [vmem:[#allocation6] sm:$0xf]  ;;  %vm560_vm3 = vcmask 27648   ;;  %v1616_v11 = vmov 1  }
  0xc5   : > { %v1928_v2 = vshrl.u32 %v386_v0, 7  ;;  %v556_v3 = vand.u32 127, %v386_v0  ;;  %1178 = vmatprep.subr.mxu1 %v1614_v1  ;;  %1180 = vmatprep.mubr.msk.f32.mxu1 %vm1615_vm0, %v1614_v1  ;;  %v1617_v12 = vmov 0   ;;  %v1618_v13 = vmov 0.0|0.0   ;;  %v361_v14 = vld [vmem:[#allocation3 + $0x8] sm:$0xff]  ;;  %v362_v16 = vld [vmem:[#allocation3 + $0x10] sm:$0xff] }
  0xc6   : > { %1174 = vmatpush3.msra.mxu0 %v550_v5  ;;  %1325 = vset.pattern.permute.xlu1 %v1616_v11  ;;  %v1619_v15 = vmov 2   ;;  %v363_v17 = vld [vmem:[#allocation3 + $0x18] sm:$0xff]  ;;  %vm654_vm4 = vcmask 1043456   ;;  %vm650_vm5 = vcmask 31744   ;;  %v551_v33 = vld [vmem:[#allocation11] sm:$0xff]  ;;  %vm729_vm6 = vcmask 130048  }
  0xc7   : > { %vm557_vm1 = vcmp.eq.s32.totalorder %v1928_v2, %v556_v3  ;;  %1176 = vmatmul.mubr.msk.f32.vlgmr.msra.gmra.mrb[0].mxu0 %vm576_vm2, %v549_v6  ;;  %1324 = vset.pattern.permute.xlu0 %v1617_v12  ;;  %v552_v34 = vld [vmem:[#allocation11 + $0x8] sm:$0xff]  ;;  %v364_v36 = vld [vmem:[%s1919_s10] sm:$0x77]  ;;  %v430_v37 = vsub.s32 1, %v1928_v2  ;;  %v434_v38 = vsub.s32 5, %v1928_v2  ;;  %v388_v40 = vsub.s32 0, %v1928_v2 }
  0xc8   : > { %v558_v4 = vsel %vm557_vm1, 1.0, %v1614_v1  ;;  %1187 = vmatprep.mubr.msk.f32.mxu0 %vm1615_vm0, %v1614_v1  ;;  %413 = vperm.xlu1 %1325, %v360_v10   ;;  %v1201_v35 = vpack.c.bf16 %v552_v34, %v551_v33  ;;  %v392_v41 = vsub.s32 4, %v1928_v2  ;;  %v480_v42 = vsub.s32 2, %v1928_v2  ;;  %s1158_s30 = sshll.u32 %s1596_s24, 4  ;;  %s349_s20 = scalar_lea.vmem [#allocation14], %s1915_s7 }
  0xc9   : > { %v559_v8 = vadd.f32 %v558_v4, %v548_v7  ;;  %1200 = vmatprep.subr.bf16.mxu0 %v1618_v13  ;;  %v484_v43 = vsub.s32 6, %v1928_v2  ;;  %v431_v44 = vrot.slane %v364_v36, %v430_v37  ;;  %v435_v45 = vrot.slane %v364_v36, %v434_v38  ;;  %s1004_s12 = sshll.u32 %s349_s20, 4  ;;  %s1979_s14 = scalar_lea.hbm %s2034_s6, %s1158_s30  ;;  %s1981_s12 = int_to_ptr.vmem [resolvable:$true] %s1004_s12 }
  0xca   : > { %1202 = vmatpush3.bf16.msra.mxu0 %v1201_v35  ;;  %v389_v46 = vrot.slane %v364_v36, %v388_v40  ;;  %v393_v47 = vrot.slane %v364_v36, %v392_v41  ;;  %v481_v54 = vrot.slane %v364_v36, %v480_v42  ;;  %vm355_vm7 = vcmask 7168   ;;  %s992_s29 = scalar_lea.sflag [#allocation5], %s1915_s7  ;;  %s1510_s16 = scalar_lea.vmem %s1981_s12, 16 }
  0xcb   : > { %v561_v9 = vsel %vm560_vm3, %v559_v8, 0.0  ;;  %1195 = vmatprep.subr.mxu0 %v1614_v1  ;;  %v441_v48 = vrot.slane %v431_v44, %v430_v37  ;;  %v445_v49 = vrot.slane %v435_v45, %v430_v37  ;;  %v485_v55 = vrot.slane %v364_v36, %v484_v43  ;;  %356 = vst.msk [vmem:[#allocation2] sm:$0xff] %vm355_vm7, %v1614_v1  ;;  %p1511_p6 = scmp.ne.s32.totalorder %s1981_s12, %s1510_s16  ;;  %p2057_p13 = scmp.ne.s32.totalorder %s2052_s27, 0 }
  0xcc   : > { %562 = vadd.xlane.f32.xlu0 %v561_v9  ;;  %1326 = vset.pattern.permute.xlu1 %v1617_v12  ;;  %v566_v18 = vrot.slane %v561_v9, 4  ;;  %v399_v50 = vrot.slane %v389_v46, %v388_v40  ;;  %v403_v51 = vrot.slane %v393_v47, %v388_v40  ;;  %v491_v61 = vrot.slane %v481_v54, %v480_v42  ;;  %s1620_s24 = smov [#allocation14]  }
  0xcd   : > { %372 = vperm.xlu1 %1326, %v361_v14   ;;  %v495_v62 = vrot.slane %v485_v55, %v480_v42  ;;  %357 = vst.msk [vmem:[#allocation2 + $0x8] sm:$0xff] %vm355_vm7, %v1614_v1  ;;  %358 = vst.msk [vmem:[#allocation2 + $0x10] sm:$0xff] %vm355_vm7, %v1614_v1  ;;  %vm912_vm8 = vcmask 261120   ;;  %vm989_vm9 = vcmask 24576   ;;  %p1512_p2 = pnand %p1511_p6, %p2057_p13  ;;  %s1514_s8 = sshll.u32 %s1620_s24, 4  ;;  %s1515_s8 = int_to_ptr.vmem [resolvable:$false] %s1514_s8 }
  0xce   : > { %v567_v19 = vadd.f32 %v566_v18, %v561_v9  ;;  %359 = vst.msk [vmem:[#allocation2 + $0x18] sm:$0xff] %vm355_vm7, %v1614_v1  ;;  %s1516_s17 = scalar_lea.vmem %s1515_s8, 32  ;;  %p1517_p11 = scmp.lt.s32.totalorder %s1981_s12, %s1515_s8 }
  0xcf   : > { %p1513_p5 = pneg %p1512_p2  ;;  %p1518_p12 = scmp.lt.s32.totalorder %s1516_s17, %s1510_s16 }
  0xd0   : > { %v568_v20 = vrot.slane %v567_v19, 2 }
  0xd1   : > { %1327 = vset.pattern.permute.xlu1 %v1616_v11  ;;  %p1519_p0 = por %p1518_p12, %p1517_p11 }
  0xd2   : > { %417 = vperm.xlu1 %1327, %v361_v14   ;;  %v569_v21 = vadd.f32 %v568_v20, %v567_v19 }
  0xd3   : > { %p1520_p8 = pnand %p1519_p0, %p1513_p5 }
  0xd4   : > { %v570_v22 = vrot.slane %v569_v21, 1 }
  0xd6   : > { %1328 = vset.pattern.permute.xlu1 %v1619_v15  ;;  %v571_v24 = vadd.f32 %v570_v22, %v569_v21 }
  0xd7   : > { %463 = vperm.xlu1 %1328, %v360_v10  }
  0xd8   : > { %v572_v26 = vmax.f32 %v571_v24, 1e-06 }
  0xdb   : > { %1329 = vset.pattern.permute.xlu1 %v1617_v12 }
  0xdc   : > { %377 = vperm.xlu1 %1329, %v362_v16  }
  0xe0   : > { %1330 = vset.pattern.permute.xlu1 %v1616_v11 }
  0xe1   : > { %421 = vperm.xlu1 %1330, %v362_v16  }
  0xe2   : > { %367 = vperm.xlu0 %1324, %v360_v10  }
  0xe5   : > { %1331 = vset.pattern.permute.xlu1 %v1619_v15 }
  0xe6   : > { %467 = vperm.xlu1 %1331, %v361_v14  }
  0xea   : > { %1332 = vset.pattern.permute.xlu1 %v1617_v12 }
  0xeb   : > { %382 = vperm.xlu1 %1332, %v363_v17  }
  0xef   : > { %1333 = vset.pattern.permute.xlu1 %v1616_v11 }
  0xf0   : > { %425 = vperm.xlu1 %1333, %v363_v17  }
  0xf4   : > { %1334 = vset.pattern.permute.xlu1 %v1619_v15 }
  0xf5   : > { %471 = vperm.xlu1 %1334, %v362_v16  }
  0xf9   : > { %475 = vperm.xlu1 %1334, %v363_v17  }
 0x147   : > { %v414_v39 = vpop.permute.xlu1 %413 }
 0x148   : > { %v446_v56 = vmul.f32 %v441_v48, %v414_v39  ;;  %v447_v57 = vmul.f32 %v445_v49, %v414_v39 }
 0x14c   : > { %v373_v52 = vpop.permute.xlu1 %372 }
 0x14d   : > { %v406_v10 = vmul.f32 %v399_v50, %v373_v52  ;;  %v407_v11 = vmul.f32 %v403_v51, %v373_v52 }
 0x151   : > { %v418_v60 = vpop.permute.xlu1 %417 }
 0x152   : > { %v448_v12 = vmul.f32 %v441_v48, %v418_v60  ;;  %v449_v13 = vmul.f32 %v445_v49, %v418_v60 }
 0x154   : > { %v456_v17 = vadd.f32 %v448_v12, %v406_v10  ;;  %v457_v18 = vadd.f32 %v449_v13, %v407_v11 }
 0x156   : > { %v464_v2 = vpop.permute.xlu1 %463 }
 0x157   : > { %v496_v3 = vmul.f32 %v491_v61, %v464_v2  ;;  %v497_v4 = vmul.f32 %v495_v62, %v464_v2  ;;  %v520_v2 = vld [vmem:[#allocation2] sm:$0xff] }
 0x159   : > { %v563_v23 = vpop.xlane.xlu0 %562 }
 0x15a   : > { %v564_v25 = vmax.f32 %v563_v23, 1e-06 }
 0x15b   : > { %v378_v7 = vpop.permute.xlu1 %377 }
 0x15c   : > { %1336 = vrsqrt.f32 %v564_v25 }
 0x15d   : > { %1338 = vrsqrt.f32 %v572_v26 }
 0x160   : > { %v422_v16 = vpop.permute.xlu1 %421 }
 0x161   : > { %v368_v53 = vpop.permute.xlu0 %367 }
 0x162   : > { %v404_v58 = vmul.f32 %v399_v50, %v368_v53  ;;  %v405_v59 = vmul.f32 %v403_v51, %v368_v53 }
 0x164   : > { %v454_v63 = vadd.f32 %v446_v56, %v404_v58  ;;  %v455_v0 = vadd.f32 %v447_v57, %v405_v59 }
 0x165   : > { %v468_v19 = vpop.permute.xlu1 %467 }
 0x166   : > { %v1337_v27 = vpop.eup %1336  ;;  %v504_v5 = vadd.f32 %v496_v3, %v454_v63  ;;  %v505_v6 = vadd.f32 %v497_v4, %v455_v0  ;;  %v498_v20 = vmul.f32 %v491_v61, %v468_v19  ;;  %v499_v21 = vmul.f32 %v495_v62, %v468_v19  ;;  %v521_v3 = vld [vmem:[#allocation2 + $0x8] sm:$0xff]  ;;  %v522_v4 = vld [vmem:[#allocation2 + $0x10] sm:$0xff] }
 0x167   : > { %v574_v28 = vmul.f32 %v1337_v27, %v559_v8  ;;  %v1339_v29 = vpop.eup %1338  ;;  %v408_v27 = vmul.f32 %v399_v50, %v378_v7 }
 0x168   : > { %v512_v8 = vmax.f32 %v504_v5, 0.0  ;;  %v513_v9 = vmax.f32 %v505_v6, 0.0  ;;  %v506_v22 = vadd.f32 %v498_v20, %v456_v17  ;;  %v507_v23 = vadd.f32 %v499_v21, %v457_v18 }
 0x169   : > { %v1940_v30 = vmul.f32 %v1339_v29, %v574_v28  ;;  %v409_v28 = vmul.f32 %v403_v51, %v378_v7  ;;  %v450_v29 = vmul.f32 %v441_v48, %v422_v16 }
 0x16a   : > { %v524_v14 = vmax.f32 %v512_v8, %v513_v9  ;;  %v383_v24 = vpop.permute.xlu1 %382  ;;  %v514_v25 = vmax.f32 %v506_v22, 0.0  ;;  %v515_v26 = vmax.f32 %v507_v23, 0.0  ;;  %v523_v8 = vld [vmem:[#allocation2 + $0x18] sm:$0xff] }
 0x16b   : > { %v458_v34 = vadd.f32 %v450_v29, %v408_v27  ;;  %v410_v36 = vmul.f32 %v399_v50, %v383_v24  ;;  %v411_v37 = vmul.f32 %v403_v51, %v383_v24 }
 0x16c   : > { %525 = vmax.xlane.f32.xlu1 %v524_v14 }
 0x16f   : > { %v426_v33 = vpop.permute.xlu1 %425 }
 0x170   : > { %v452_v38 = vmul.f32 %v441_v48, %v426_v33  ;;  %v453_v39 = vmul.f32 %v445_v49, %v426_v33 }
 0x172   : > { %v460_v43 = vadd.f32 %v452_v38, %v410_v36  ;;  %v461_v44 = vadd.f32 %v453_v39, %v411_v37 }
 0x174   : > { %v472_v40 = vpop.permute.xlu1 %471 }
 0x175   : > { %v500_v41 = vmul.f32 %v491_v61, %v472_v40  ;;  %v501_v42 = vmul.f32 %v495_v62, %v472_v40 }
 0x177   : > { %v508_v45 = vadd.f32 %v500_v41, %v458_v34 }
 0x178   : > { %v476_v47 = vpop.permute.xlu1 %475 }
 0x179   : > { %v516_v52 = vmax.f32 %v508_v45, 0.0  ;;  %v502_v54 = vmul.f32 %v491_v61, %v476_v47  ;;  %v503_v55 = vmul.f32 %v495_v62, %v476_v47 }
 0x17b   : > { %v510_v57 = vadd.f32 %v502_v54, %v460_v43  ;;  %v511_v58 = vadd.f32 %v503_v55, %v461_v44 }
 0x17d   : > { %v518_v50 = vmax.f32 %v510_v57, 0.0  ;;  %v519_v51 = vmax.f32 %v511_v58, 0.0 }
 0x17f   : > { %v533_v48 = vmax.f32 %v518_v50, %v519_v51 }
 0x181   : > { %534 = vmax.xlane.f32.xlu1 %v533_v48 }
 0x19a   : > { %v646_v31 = vpop.f32.mrb[0].mxu0 }
 0x19b   : > { %v1177_v32 = vpop.f32.mrb[1].mxu0  ;;  %1179 = vmatpush3.msk.msra.mxu1 %vm654_vm4, %v646_v31  ;;  %v451_v31 = vmul.f32 %v445_v49, %v422_v16 }
 0x19c   : > { %1181 = vmatmul.mubr.msk.f32.vlgmr.msra.gmra.mrb[0].mxu1 %vm650_vm5, %v1940_v30  ;;  %1190 = vmatprep.subr.mxu1 %v1614_v1  ;;  %v527_v32 = vmax.f32 %v514_v25, %v515_v26 }
 0x19d   : > { %1192 = vmatprep.mubr.msk.f32.mxu1 %vm1615_vm0, %v1614_v1  ;;  %v459_v35 = vadd.f32 %v451_v31, %v409_v28 }
 0x19e   : > { %528 = vmax.xlane.f32.xlu0 %v527_v32 }
 0x19f   : > { %v509_v46 = vadd.f32 %v501_v42, %v459_v35 }
 0x1a1   : > { %v517_v53 = vmax.f32 %v509_v46, 0.0 }
 0x1a3   : > { %v530_v56 = vmax.f32 %v516_v52, %v517_v53 }
 0x1a5   : > { %531 = vmax.xlane.f32.xlu0 %v530_v56 }
 0x1f9   : > { %v526_v62 = vpop.xlane.xlu1 %525 }
 0x1fa   : > { %v536_v5 = vmax.f32 %v520_v2, %v526_v62 }
 0x1fc   : > { %541 = vst.msk [vmem:[#allocation2] sm:$0xff] %vm355_vm7, %v536_v5 }
 0x20e   : > { %v535_v0 = vpop.xlane.xlu1 %534 }
 0x20f   : > { %v539_v9 = vmax.f32 %v523_v8, %v535_v0 }
 0x211   : > { %544 = vst.msk [vmem:[#allocation2 + $0x18] sm:$0xff] %vm355_vm7, %v539_v9 }
 0x218   : > { %v879_v12 = vld [vmem:[#allocation2 + $0x18] sm:$0xff] }
 0x22b   : > { %v529_v61 = vpop.xlane.xlu0 %528 }
 0x22c   : > { %v537_v6 = vmax.f32 %v521_v3, %v529_v61 }
 0x22e   : > { %542 = vst.msk [vmem:[#allocation2 + $0x8] sm:$0xff] %vm355_vm7, %v537_v6 }
 0x232   : > { %v532_v63 = vpop.xlane.xlu0 %531 }
 0x233   : > { %v538_v7 = vmax.f32 %v522_v4, %v532_v63 }
 0x235   : > { %543 = vst.msk [vmem:[#allocation2 + $0x10] sm:$0xff] %vm355_vm7, %v538_v7  ;;  %v877_v10 = vld [vmem:[#allocation2 + $0x8] sm:$0xff] }
 0x23c   : > { %v878_v11 = vld [vmem:[#allocation2 + $0x10] sm:$0xff] }
 0x26f   : > { %v724_v49 = vpop.f32.mrb[0].mxu1 }
 0x270   : > { %v728_v59 = vmax.f32 %v724_v49, 0.0  ;;  %v1182_v60 = vpop.f32.mrb[1].mxu1 }
 0x272   : > { %1188 = vmatmul.mubr.msk.f32.vlgmr.msra.gmra.mrb[2].mxu0 %vm729_vm6, %v728_v59 }
 0x273   : > { %1197 = vmatprep.mubr.msk.f32.mxu0 %vm1615_vm0, %v1614_v1  ;;  %v876_v1 = vld [vmem:[#allocation2] sm:$0xff] }
 0x274   : > { %880 = vxpose.xlu0.b32.start [1/4] (short) (narrow) %v876_v1, 8 }
 0x278   : > { %881 = vxpose.xlu0.b32.cont [2/4] (short) (narrow) %v877_v10, 8 }
 0x27c   : > { %882 = vxpose.xlu0.b32.cont [3/4] (short) (narrow) %v878_v11, 8 }
 0x280   : > { %883 = vxpose.xlu0.b32.end [4/4] (short) (narrow) %v879_v12, 8 }
 0x2a9   : > { %1335 = vset.pattern.permute.xlu0 %v1619_v15 }
 0x2f4   : > { %v896_v18 = vpop.trf.xlu0 }
 0x345   : > { %v799_v13 = vpop.f32.mrb[2].mxu0 }
 0x346   : > { %v1189_v14 = vpop.f32.mrb[3].mxu0  ;;  %1191 = vmatpush3.msk.msra.mxu1 %vm654_vm4, %v799_v13 }
 0x347   : > { %1193 = vmatmul.mubr.msk.f32.vlgmr.msra.gmra.mrb[2].mxu1 %vm650_vm5, %v1940_v30 }
 0x41a   : > { %v872_v16 = vpop.f32.mrb[2].mxu1 }
 0x41b   : > { %v1194_v17 = vpop.f32.mrb[3].mxu1  ;;  %1196 = vmatpush3.xpose.msk.msra.mxu0 %vm912_vm8, %v872_v16 }
 0x41e   : > { %1198 = vmatmul.mubr.msk.f32.vlgmr.msra.gmra.mrb[4].mxu0 %vm912_vm8, %v896_v18 }
 0x4f1   : > { %v985_v15 = vpop.f32.mrb[4].mxu0 }
 0x4f2   : > { %990 = vst.msk [vmem:[%s349_s20] sm:$0x1] %vm989_vm9, %v985_v15  ;;  %v1199_v30 = vpop.f32.mrb[5].mxu0 }
 0x4f3   : > { %1523 = shalt.err (!%p1520_p8)
}
 0x4f4   : > { %s1524_s13 = scalar_lea.hbm %s1979_s14, 16  ;;  %s1528_s19 = scalar_lea.hbm %s2034_s6, 32 }
 0x4f5   : > { %p1525_p9 = scmp.ne.s32.totalorder %s1979_s14, %s1524_s13  ;;  %p1529_p10 = scmp.lt.u32.totalorder %s1979_s14, %s2034_s6 }
 0x4f6   : > { %p1530_p4 = scmp.lt.u32.totalorder %s1528_s19, %s1524_s13  ;;  %p1532_p6 = scmp.lt.u32.totalorder %s1524_s13, %s1979_s14 }
 0x4f7   : > { %p1526_p1 = pnand %p1525_p9, %p2057_p13 }
 0x4f8   : > { %p1531_p7 = por %p1530_p4, %p1529_p10 }
 0x4f9   : > { %p1527_p3 = pneg %p1526_p1 }
 0x4fa   : > { %p1533_p2 = por %p1532_p6, %p1531_p7 }
 0x4fc   : > { %p1534_p5 = pnand %p1533_p2, %p1527_p3 }
 0x4fe   : > { %1537 = shalt.err (!%p1534_p5)
}
 0x4ff   : > { %1225 = dma.vmem_to_hbm [thread:$0]  (%p2057_p13), %s1981_s12, 16, %s1979_s14, %s992_s29  }
 0x500 PF: > { %s1016_s30 = sand.u32 1, %s1584_s21   ;;  %p2058_p11 = scmp.ne.s32.totalorder %s2053_s3, 0 }
 0x501   : > { %p2059_p12 = scmp.ge.s32.totalorder %s1604_s26, 2  ;;  %s1017_s20 = scalar_lea.sflag [#allocation5], %s1016_s30 }
 0x503   : > { %p1248_p0 = pnand %p2059_p12, %p2058_p11 }
 0x505   : > { %1579 = dma.done.wait (!%p1248_p0), %s1017_s20, 16  }
 0x506   : > { %1581 = vsyncadd (!%p1248_p0), %s1017_s20, 4294967280  ;;  %s25_s26 = sadd.s32 1, %s1604_s26   ;;  %s2060_s21 = smov %s1588_s22 }
 0x507   : > { %p22_p8 = scmp.ge.s32.totalorder %s25_s26, 4   ;;  %s2061_s22 = smov %s1592_s23 }
 0x508   : > { %s2062_s23 = smov %s1854_s1  ;;  %s2063_s24 = smov %s1600_s25 }
 0x509   : > { %s2064_s25 = smov %s2066_s18  ;;  %24 = sbr.rel (!%p22_p8) target bundleno = 12 (0xc), region = 118 }
 0x510   :  { %1021 = vsyncpa [#allocation4], 1 }
 0x511   :  { %1023 = vsyncpa [#allocation4 + $0x1], 1 }
 0x512   :  { %1024 = vsyncpa [#allocation7], 1 }
 0x513   :  { %1025 = vsyncpa [#allocation10], 1 }
 0x514   :  { %1026 = vsyncpa [#allocation13], 1 }
 0x515   :  { %1028 = vsyncpa [#allocation13 + $0x1], 1 }
 0x516   :  { %1029 = vsyncpa [#allocation5], 1 }
 0x517   :  { %1031 = vsyncpa [#allocation5 + $0x1], 1 }

</bundles_post_ra>
